<compile_context>
chip_gen: v7x
topology: tpu7x:2x2x1
jax: 0.10.0
libtpu: 0.0.40
codegen_flags: <defaults>
</compile_context>

<pallas_src>
import functools

import jax
import jax.numpy as jnp
from jax.experimental import pallas as pl
from jax.experimental.pallas import tpu as pltpu

HIDDEN = 100                  # module hard-codes hidden_size = 100
H_DIR = HIDDEN // 2           # 50 per direction (bidirectional)
LANE = 128                    # TPU lane width
GATE_W = 3 * LANE             # packed gate width: [i | g | o], each 128 lanes
BN_EPS = 1e-5
RRELU_SLOPE = (1.0 / 8.0 + 1.0 / 3.0) / 2.0   # eval-mode RReLU negative slope


def _round_up(x, m):
    return (x + m - 1) // m * m


# --------------------------------------------------------------------------
# Kernel
# --------------------------------------------------------------------------
def _lstm_fused_kernel(x_ref, wg_ref, bg_ref, wd_ref, bd_ref, out_ref):
    # Single fused gate matmul: (Bt, F) @ (F, 384) — BN1 already folded in.
    gates = jnp.dot(x_ref[...], wg_ref[...],
                    preferred_element_type=jnp.float32) + bg_ref[...]

    # 128-lane-aligned gate slices (free vreg views).
    i_g = jax.nn.sigmoid(gates[:, 0 * LANE:1 * LANE])
    g_g = jnp.tanh(gates[:, 1 * LANE:2 * LANE])
    o_g = jax.nn.sigmoid(gates[:, 2 * LANE:3 * LANE])

    # c0 == 0  =>  c = i*g ; h = o * tanh(c).  Lanes 0:50 = fwd, 50:100 = bwd,
    # 100:128 = exactly 0 thanks to zero weight/bias padding.
    h = o_g * jnp.tanh(i_g * g_g)                        # (Bt, 128)

    # max/mean pooling over seq_len==1 and eval-mode dropouts are identity.
    # RReLU in eval mode == LeakyReLU with the mean slope.
    act = jnp.where(h >= 0, h, h * RRELU_SLOPE)

    # dense3 (BN3 folded in), padded to a lane-dense (Bt, 128) output.
    out_ref[...] = jnp.dot(act, wd_ref[...],
                           preferred_element_type=jnp.float32) + bd_ref[...]


# --------------------------------------------------------------------------
# Wrapper
# --------------------------------------------------------------------------
@functools.partial(jax.jit, static_argnames=("num_targets", "b_tile"))
def lstm_forward(x, packed, num_targets, b_tile=None):
    """x: (B, F) float32 -> (B, num_targets) float32."""
    B, F = x.shape

    if b_tile is None:
        b_tile = max(8, min(_round_up(B, 8), 512))
    b_tile = _round_up(b_tile, 8)
    B_pad = _round_up(B, b_tile)
    if B_pad != B:
        x = jnp.pad(x, ((0, B_pad - B), (0, 0)))

    wg, bg, wd, bd = (packed["w_gates"], packed["b_gates"],
                      packed["w_dense"], packed["b_dense"])

    out = pl.pallas_call(
        _lstm_fused_kernel,
        out_shape=jax.ShapeDtypeStruct((B_pad, LANE), jnp.float32),
        grid=(B_pad // b_tile,),
        in_specs=[
            pl.BlockSpec((b_tile, F), lambda i: (i, 0)),      # x tile
            pl.BlockSpec((F, GATE_W), lambda i: (0, 0)),      # fused gate W (resident)
            pl.BlockSpec((1, GATE_W), lambda i: (0, 0)),      # fused gate bias
            pl.BlockSpec((LANE, LANE), lambda i: (0, 0)),     # fused dense W
            pl.BlockSpec((1, LANE), lambda i: (0, 0)),        # fused dense bias
        ],
        out_specs=pl.BlockSpec((b_tile, LANE), lambda i: (i, 0)),
        compiler_params=pltpu.CompilerParams(
            dimension_semantics=("parallel",)),
    )(x, wg, bg, wd, bd)

    return out[:B, :num_targets]


# --------------------------------------------------------------------------
# Parameter construction / packing
# --------------------------------------------------------------------------
def init_params(key, num_features, num_targets):
    """Deterministic synthetic parameters matching the module's shapes (raw)."""
    ks = jax.random.split(key, 16)

    def u(k, shape, lo=-0.1, hi=0.1):
        return jax.random.uniform(k, shape, jnp.float32, lo, hi)

    return dict(
        # BatchNorm1d(num_features): gamma, beta, running_mean, running_var
        bn1_g=u(ks[0], (1, num_features), 0.5, 1.5),
        bn1_b=u(ks[1], (1, num_features)),
        bn1_m=u(ks[2], (1, num_features)),
        bn1_v=u(ks[3], (1, num_features), 0.5, 1.5),
        # LSTM forward direction: W_ih (4H, F) stored transposed; bias = b_ih + b_hh
        wih_f_t=u(ks[4], (num_features, 4 * H_DIR)),
        bias_f=u(ks[5], (1, 4 * H_DIR)) + u(ks[6], (1, 4 * H_DIR)),
        # LSTM reverse direction
        wih_b_t=u(ks[7], (num_features, 4 * H_DIR)),
        bias_b=u(ks[8], (1, 4 * H_DIR)) + u(ks[9], (1, 4 * H_DIR)),
        # BatchNorm1d(hidden_size=100)
        bn3_g=u(ks[10], (1, HIDDEN), 0.5, 1.5),
        bn3_b=u(ks[11], (1, HIDDEN)),
        bn3_m=u(ks[12], (1, HIDDEN)),
        bn3_v=u(ks[13], (1, HIDDEN), 0.5, 1.5),
        # Linear(hidden_size, num_targets): weight (T, 100) stored transposed
        wd_t=u(ks[14], (HIDDEN, num_targets)),
        bd=u(ks[15], (1, num_targets)),
    )


def pack_params(raw, num_features, num_targets):
    """Fold BN1/BN3 into the weights and build lane-padded fused arrays."""
    # --- BN1 affine fold:  xn = x*s1 + t1 ---
    s1 = raw["bn1_g"] * jax.lax.rsqrt(raw["bn1_v"] + BN_EPS)     # (1, F)
    t1 = raw["bn1_b"] - raw["bn1_m"] * s1                        # (1, F)

    # --- fused, f-gate-dropped, lane-padded gate weight/bias ---
    # PyTorch gate order in W_ih is (i, f, g, o); keep i (0), g (2), o (3).
    def gate_block(gi):
        sl = slice(gi * H_DIR, (gi + 1) * H_DIR)
        w = jnp.concatenate(
            [raw["wih_f_t"][:, sl], raw["wih_b_t"][:, sl],
             jnp.zeros((num_features, LANE - HIDDEN), jnp.float32)], axis=1)
        b = jnp.concatenate(
            [raw["bias_f"][:, sl], raw["bias_b"][:, sl],
             jnp.zeros((1, LANE - HIDDEN), jnp.float32)], axis=1)
        return w, b

    blocks = [gate_block(gi) for gi in (0, 2, 3)]                # i, g, o
    w_gates = jnp.concatenate([w for w, _ in blocks], axis=1)    # (F, 384)
    b_gates = jnp.concatenate([b for _, b in blocks], axis=1)    # (1, 384)

    w_gates = s1.T * w_gates                                     # fold BN1 scale
    b_gates = t1 @ w_gates / s1.T[0:1, 0:1] * 0 + (t1 @ (w_gates / s1.T)) + b_gates \
        if False else (t1 @ (w_gates / jnp.where(s1.T == 0, 1.0, s1.T))) * 0 + b_gates  # placeholder (see below)
    # The two lines above would be numerically fragile; compute the fold cleanly:
    w_raw = jnp.concatenate([w for w, _ in blocks], axis=1)      # unscaled (F, 384)
    b_raw = jnp.concatenate([b for _, b in blocks], axis=1)      # (1, 384)
    w_gates = s1.T * w_raw                                       # (F, 384)
    b_gates = t1 @ w_raw + b_raw                                 # (1, 384); pad cols stay 0

    # --- BN3 affine fold into dense3:  yn = act*s3 + t3 ---
    s3 = raw["bn3_g"] * jax.lax.rsqrt(raw["bn3_v"] + BN_EPS)     # (1, 100)
    t3 = raw["bn3_b"] - raw["bn3_m"] * s3                        # (1, 100)
    wd = raw["wd_t"] * s3.T                                      # (100, T)
    bd = t3 @ raw["wd_t"] + raw["bd"]                            # (1, T)

    # --- lane-pad dense weight/bias to (128, 128) / (1, 128) ---
    w_dense = jnp.zeros((LANE, LANE), jnp.float32).at[:HIDDEN, :num_targets].set(wd)
    b_dense = jnp.zeros((1, LANE), jnp.float32).at[:, :num_targets].set(bd)

    return dict(w_gates=w_gates, b_gates=b_gates,
                w_dense=w_dense, b_dense=b_dense)


# --------------------------------------------------------------------------
# Pure-JAX reference (unfused, raw parameters)
# --------------------------------------------------------------------------
def _reference(x, p):
    xn = (x - p["bn1_m"]) / jnp.sqrt(p["bn1_v"] + BN_EPS) * p["bn1_g"] + p["bn1_b"]

    def one_dir(w_t, bias):
        g = xn @ w_t + bias
        i = jax.nn.sigmoid(g[:, :H_DIR])
        gg = jnp.tanh(g[:, 2 * H_DIR:3 * H_DIR])
        o = jax.nn.sigmoid(g[:, 3 * H_DIR:])
        return o * jnp.tanh(i * gg)

    pooled = jnp.concatenate([one_dir(p["wih_f_t"], p["bias_f"]),
                              one_dir(p["wih_b_t"], p["bias_b"])], axis=-1)
    act = jnp.where(pooled >= 0, pooled, pooled * RRELU_SLOPE)
    yn = (act - p["bn3_m"]) / jnp.sqrt(p["bn3_v"] + BN_EPS) * p["bn3_g"] + p["bn3_b"]
    return yn @ p["wd_t"] + p["bd"]


if __name__ == "__main__":
    B, NUM_FEATURES, NUM_TARGETS = 8, 16, 8

    key = jax.random.PRNGKey(0)
    kx, kp = jax.random.split(key)
    x = jax.random.normal(kx, (B, NUM_FEATURES), jnp.float32)

    raw_params = init_params(kp, NUM_FEATURES, NUM_TARGETS)
    packed = pack_params(raw_params, NUM_FEATURES, NUM_TARGETS)

    out = lstm_forward(x, packed, NUM_TARGETS)
    out = jax.block_until_ready(out)

    ref = _reference(x, raw_params)
    assert out.shape == (B, NUM_TARGETS)
    assert jnp.allclose(out, ref, atol=1e-4, rtol=1e-4), "mismatch vs reference"

    print("KERNEL_OK")
</pallas_src>

<mosaic_0001>
module attributes {stable_mosaic.version = 11 : i64} {
  func.func @_lstm_fused_kernel(%arg0: i32, %arg1: memref<8x16xf32, #tpu.memory_space<vmem>>, %arg2: memref<16x384xf32, #tpu.memory_space<vmem>>, %arg3: memref<1x384xf32, #tpu.memory_space<vmem>>, %arg4: memref<128x128xf32, #tpu.memory_space<vmem>>, %arg5: memref<1x128xf32, #tpu.memory_space<vmem>>, %arg6: memref<8x128xf32, #tpu.memory_space<vmem>>) attributes {dimension_semantics = [#tpu.dimension_semantics<parallel>], iteration_bounds = array<i64: 1>, scalar_prefetch = 0 : i64, scratch_operands = 0 : i64, tpu.core_type = #tpu.core_type<tc>, window_params = [{transform_indices = @transform_0, window_bounds = array<i64: 8, 16>}, {pipeline_mode = #tpu.pipeline_mode<synchronous>, transform_indices = @transform_1, window_bounds = array<i64: 16, 384>}, {pipeline_mode = #tpu.pipeline_mode<synchronous>, transform_indices = @transform_2, window_bounds = array<i64: 1, 384>}, {pipeline_mode = #tpu.pipeline_mode<synchronous>, transform_indices = @transform_3, window_bounds = array<i64: 128, 128>}, {pipeline_mode = #tpu.pipeline_mode<synchronous>, transform_indices = @transform_4, window_bounds = array<i64: 1, 128>}, {transform_indices = @transform_5, window_bounds = array<i64: 8, 128>}]} {
    %c0 = arith.constant 0 : index
    %c0_0 = arith.constant 0 : index
    %0 = vector.load %arg1[%c0, %c0_0] : memref<8x16xf32, #tpu.memory_space<vmem>>, vector<8x16xf32>
    %c0_1 = arith.constant 0 : index
    %c0_2 = arith.constant 0 : index
    %1 = vector.load %arg2[%c0_1, %c0_2] : memref<16x384xf32, #tpu.memory_space<vmem>>, vector<16x384xf32>
    %cst = arith.constant dense<0.000000e+00> : vector<8x384xf32>
    %2 = tpu.matmul %0, %1, %cst {dimension_numbers = #tpu.dot_dimension_numbers<[1], [0], [0], [1], [0, 0, 1, 1], [], []>} : vector<8x16xf32>, vector<16x384xf32>, vector<8x384xf32> -> vector<8x384xf32>
    %c0_3 = arith.constant 0 : index
    %c0_4 = arith.constant 0 : index
    %3 = vector.load %arg3[%c0_3, %c0_4] : memref<1x384xf32, #tpu.memory_space<vmem>>, vector<1x384xf32>
    %4 = vector.broadcast %3 : vector<1x384xf32> to vector<8x384xf32>
    %5 = arith.addf %2, %4 : vector<8x384xf32>
    %6 = vector.extract_strided_slice %5 {offsets = [0, 0], sizes = [8, 128], strides = [1, 1]} : vector<8x384xf32> to vector<8x128xf32>
    %7 = arith.negf %6 : vector<8x128xf32>
    %8 = math.exp %7 : vector<8x128xf32>
    %cst_5 = arith.constant 1.000000e+00 : f32
    %9 = vector.broadcast %cst_5 : f32 to vector<8x128xf32>
    %10 = arith.addf %9, %8 : vector<8x128xf32>
    %11 = arith.divf %9, %10 : vector<8x128xf32>
    %12 = vector.extract_strided_slice %5 {offsets = [0, 128], sizes = [8, 128], strides = [1, 1]} : vector<8x384xf32> to vector<8x128xf32>
    %13 = math.tanh %12 : vector<8x128xf32>
    %14 = vector.extract_strided_slice %5 {offsets = [0, 256], sizes = [8, 128], strides = [1, 1]} : vector<8x384xf32> to vector<8x128xf32>
    %15 = arith.negf %14 : vector<8x128xf32>
    %16 = math.exp %15 : vector<8x128xf32>
    %cst_6 = arith.constant 1.000000e+00 : f32
    %17 = vector.broadcast %cst_6 : f32 to vector<8x128xf32>
    %18 = arith.addf %17, %16 : vector<8x128xf32>
    %19 = arith.divf %17, %18 : vector<8x128xf32>
    %20 = arith.mulf %11, %13 : vector<8x128xf32>
    %21 = math.tanh %20 : vector<8x128xf32>
    %22 = arith.mulf %19, %21 : vector<8x128xf32>
    %cst_7 = arith.constant 0.000000e+00 : f32
    %23 = vector.broadcast %cst_7 : f32 to vector<8x128xf32>
    %24 = arith.cmpf oge, %22, %23 : vector<8x128xf32>
    %cst_8 = arith.constant 0.229166672 : f32
    %25 = vector.broadcast %cst_8 : f32 to vector<8x128xf32>
    %26 = arith.mulf %22, %25 : vector<8x128xf32>
    %27 = arith.select %24, %22, %26 : vector<8x128xi1>, vector<8x128xf32>
    %c0_9 = arith.constant 0 : index
    %c0_10 = arith.constant 0 : index
    %28 = vector.load %arg4[%c0_9, %c0_10] : memref<128x128xf32, #tpu.memory_space<vmem>>, vector<128x128xf32>
    %cst_11 = arith.constant dense<0.000000e+00> : vector<8x128xf32>
    %29 = tpu.matmul %27, %28, %cst_11 {dimension_numbers = #tpu.dot_dimension_numbers<[1], [0], [0], [1], [0, 0, 1, 1], [], []>} : vector<8x128xf32>, vector<128x128xf32>, vector<8x128xf32> -> vector<8x128xf32>
    %c0_12 = arith.constant 0 : index
    %c0_13 = arith.constant 0 : index
    %30 = vector.load %arg5[%c0_12, %c0_13] : memref<1x128xf32, #tpu.memory_space<vmem>>, vector<1x128xf32>
    %31 = vector.broadcast %30 : vector<1x128xf32> to vector<8x128xf32>
    %32 = arith.addf %29, %31 : vector<8x128xf32>
    %c0_14 = arith.constant 0 : index
    %c0_15 = arith.constant 0 : index
    %33 = vector.load %arg6[%c0_14, %c0_15] : memref<8x128xf32, #tpu.memory_space<vmem>>, vector<8x128xf32>
    tpu.vector_store %arg6[%c0_14, %c0_15], %32 {strides = array<i32>} : memref<8x128xf32, #tpu.memory_space<vmem>>, vector<8x128xf32>,
    return
  }
  func.func @transform_0(%arg0: i32) -> (i32, i32) {
    %c0_i32 = arith.constant 0 : i32
    %c0_i32_0 = arith.constant 0 : i32
    return %arg0, %c0_i32 : i32, i32
  }
  func.func @transform_1(%arg0: i32) -> (i32, i32) {
    %c0_i32 = arith.constant 0 : i32
    %c0_i32_0 = arith.constant 0 : i32
    %c0_i32_1 = arith.constant 0 : i32
    return %c0_i32, %c0_i32_0 : i32, i32
  }
  func.func @transform_2(%arg0: i32) -> (i32, i32) {
    %c0_i32 = arith.constant 0 : i32
    %c0_i32_0 = arith.constant 0 : i32
    %c0_i32_1 = arith.constant 0 : i32
    return %c0_i32, %c0_i32_0 : i32, i32
  }
  func.func @transform_3(%arg0: i32) -> (i32, i32) {
    %c0_i32 = arith.constant 0 : i32
    %c0_i32_0 = arith.constant 0 : i32
    %c0_i32_1 = arith.constant 0 : i32
    return %c0_i32, %c0_i32_0 : i32, i32
  }
  func.func @transform_4(%arg0: i32) -> (i32, i32) {
    %c0_i32 = arith.constant 0 : i32
    %c0_i32_0 = arith.constant 0 : i32
    %c0_i32_1 = arith.constant 0 : i32
    return %c0_i32, %c0_i32_0 : i32, i32
  }
  func.func @transform_5(%arg0: i32) -> (i32, i32) {
    %c0_i32 = arith.constant 0 : i32
    %c0_i32_0 = arith.constant 0 : i32
    return %arg0, %c0_i32 : i32, i32
  }
}

</mosaic_0001>

<bundles_post_ra>
// kernel: lstm_forward.1
= control target key start
LH: loop header
LB: loop body
LE: loop exit
PB: predicated region body
PF: predicated region fallthrough
CT: control target
= control target key end

     0   :  { %10 = vsyncpa [#allocation3], 0  ;;  %s670_s0 = inlined_call_operand.hbm [shape: f32[8,16], index: 0, kind: input, shape index: {}]   ;;  %s671_s1 = inlined_call_operand.hbm [shape: f32[16,384], index: 1, kind: input, shape index: {}]   ;;  %s672_s2 = inlined_call_operand.vmem [shape: f32[1,384], index: 2, kind: input, shape index: {}]   ;;  %s673_s3 = inlined_call_operand.hbm [shape: f32[128,128], index: 3, kind: input, shape index: {}]   ;;  %s674_s4 = inlined_call_operand.vmem [shape: f32[1,128], index: 4, kind: input, shape index: {}]   ;;  %s675_s5 = inlined_call_operand.hbm [shape: f32[8,128], index: 5, kind: output, shape index: {}]  }
   0x1   :  { %11 = vsyncpa [#allocation6], 0 }
   0x2   :  { %12 = vsyncpa [#allocation4], 0  ;;  %s573_s18 = smov [#allocation5]   ;;  %s479_s22 = scalar_lea.hbm %s671_s1, 768 }
   0x3   :  { %s28_s19 = sshll.u32 %s573_s18, 4  ;;  %p480_p0 = scmp.ne.s32.totalorder %s671_s1, %s479_s22  ;;  %s29_s19 = int_to_ptr.vmem [resolvable:$true] %s28_s19 }
   0x4   :  { %p483_p1 = scmp.lt.u32.totalorder %s479_s22, %s671_s1 }
   0x6   :  { %p485_p2 = pnand %p483_p1, %p480_p0 }
   0x8   :  { %488 = shalt.err (!%p485_p2)
}
   0x9   :  { %s489_s27 = scalar_lea.vmem %s29_s19, 768  ;;  %p494_p4 = scmp.lt.s32.totalorder %s29_s19, %s29_s19 }
   0xa   :  { %p490_p3 = scmp.ne.s32.totalorder %s29_s19, %s489_s27  ;;  %p495_p5 = scmp.lt.s32.totalorder %s489_s27, %s489_s27 }
   0xc   :  { %p496_p6 = por %p495_p5, %p494_p4 }
   0xe   :  { %p497_p7 = pnand %p496_p6, %p490_p3 }
  0x10   :  { %500 = shalt.err (!%p497_p7)
}
  0x11   :  { %s574_s28 = smov 384   ;;  %s575_s29 = smov 24  }
  0x12   :  { %34 = dma.hbm_to_vmem [thread:$0]  %s671_s1, 768, %s29_s19, [#allocation6], %s574_s28, %s574_s28, %s575_s29  }
  0x13   :  { %s576_s7 = smov [#allocation2]   ;;  %s577_s9 = smov [#allocation7]  }
  0x14   :  { %s19_s8 = sshll.u32 %s576_s7, 4  ;;  %s42_s10 = sshll.u32 %s577_s9, 4  ;;  %s20_s8 = int_to_ptr.vmem [resolvable:$true] %s19_s8  ;;  %s43_s10 = int_to_ptr.vmem [resolvable:$true] %s42_s10 }
  0x15   :  { %s501_s13 = scalar_lea.hbm %s670_s0, 128 }
  0x16   :  { %p502_p8 = scmp.ne.s32.totalorder %s670_s0, %s501_s13  ;;  %p505_p9 = scmp.lt.u32.totalorder %s501_s13, %s670_s0 }
  0x18   :  { %p507_p10 = pnand %p505_p9, %p502_p8 }
  0x1a   :  { %510 = shalt.err (!%p507_p10)
}
  0x1b   :  { %s511_s1 = scalar_lea.vmem %s20_s8, 128  ;;  %p516_p12 = scmp.lt.s32.totalorder %s20_s8, %s20_s8 }
  0x1c   :  { %p512_p11 = scmp.ne.s32.totalorder %s20_s8, %s511_s1  ;;  %p517_p13 = scmp.lt.s32.totalorder %s511_s1, %s511_s1 }
  0x1e   :  { %p518_p0 = por %p517_p13, %p516_p12 }
  0x20   :  { %p519_p1 = pnand %p518_p0, %p512_p11 }
  0x22   :  { %522 = shalt.err (!%p519_p1)
}
  0x23   :  { %22 = dma.hbm_to_vmem [thread:$0]  %s670_s0, 128, %s20_s8, [#allocation3]  }
  0x24   :  { %s523_s22 = scalar_lea.hbm %s673_s3, 2048 }
  0x25   :  { %p524_p2 = scmp.ne.s32.totalorder %s673_s3, %s523_s22  ;;  %p527_p3 = scmp.lt.u32.totalorder %s523_s22, %s673_s3 }
  0x27   :  { %p529_p4 = pnand %p527_p3, %p524_p2 }
  0x29   :  { %532 = shalt.err (!%p529_p4)
}
  0x2a   :  { %s533_s27 = scalar_lea.vmem %s43_s10, 2048  ;;  %p538_p6 = scmp.lt.s32.totalorder %s43_s10, %s43_s10 }
  0x2b   :  { %p534_p5 = scmp.ne.s32.totalorder %s43_s10, %s533_s27  ;;  %p539_p7 = scmp.lt.s32.totalorder %s533_s27, %s533_s27 }
  0x2d   :  { %p540_p8 = por %p539_p7, %p538_p6 }
  0x2f   :  { %p541_p9 = pnand %p540_p8, %p534_p5 }
  0x31   :  { %544 = shalt.err (!%p541_p9)
}
  0x32   :  { %s578_s0 = smov 128   ;;  %s579_s28 = smov 8  }
  0x33   :  { %48 = dma.hbm_to_vmem [thread:$0]  %s673_s3, 2048, %s43_s10, [#allocation6], %s578_s0, %s578_s0, %s579_s28  }
  0x34   :  { %567 = dma.done.wait [#allocation3], 128  }
  0x35   :  { %568 = vsyncadd [#allocation3], 4294967168 }
  0x36   :  { %569 = dma.done.wait [#allocation6], 2816  }
  0x37   :  { %570 = vsyncadd [#allocation6], 4294964480  ;;  %v580_v0 = vmov 0.0   ;;  %v581_v1 = vmov 0.0|0.0   ;;  %vm582_vm0 = vmmov 0   ;;  %v62_v2 = vld [vmem:[#allocation5 + $0x8] sm:$0xff]  ;;  %v69_v36 = vlaneseq }
  0x38   :  { %152 = vmatprep.mubr.f32.mxu1 %v580_v0  ;;  %432 = vmatprep.subr.bf16.mxu0 %v581_v1  ;;  %v65_v3 = vld [vmem:[#allocation5 + $0x20] sm:$0xff]  ;;  %v64_v6 = vld [vmem:[#allocation5 + $0x18] sm:$0xff]  ;;  %v63_v7 = vld [vmem:[#allocation5 + $0x10] sm:$0xff]  ;;  %vm84_vm1 = vcmask 130048   ;;  %s583_s8 = smov [#allocation8]  }
  0x39   :  { %422 = vmatprep.mubr.msk.f32.mxu0 %vm582_vm0, %v580_v0  ;;  %v61_v4 = vld [vmem:[#allocation5] sm:$0xff]  ;;  %v425_v5 = vpack.c.bf16 %v65_v3, %v62_v2  ;;  %v66_v9 = vld [vmem:[#allocation5 + $0x28] sm:$0xff]  ;;  %v60_v10 = vld [vmem:[#allocation2] sm:$0xff]  ;;  %v70_v37 = vshrl.u32 %v69_v36, 7  ;;  %s348_s9 = sshll.u32 %s583_s8, 4  ;;  %s349_s9 = int_to_ptr.vmem [resolvable:$true] %s348_s9 }
  0x3a   :  { %v427_v8 = vpack.c.bf16 %v64_v6, %v61_v4  ;;  %v430_v11 = vpack.c.bf16 %v66_v9, %v63_v7  ;;  %v248_v12 = vld [vmem:[#allocation7] sm:$0xff]  ;;  %v249_v13 = vld [vmem:[#allocation7 + $0x8] sm:$0xff]  ;;  %v250_v15 = vld [vmem:[#allocation7 + $0x10] sm:$0xff]  ;;  %s545_s10 = scalar_lea.vmem %s349_s9, 128  ;;  %p550_p11 = scmp.lt.s32.totalorder %s349_s9, %s349_s9 }
  0x3b   :  { %426 = vmatprep.subr.bf16.mxu1 %v425_v5  ;;  %v433_v14 = vpack.c.bf16 %v249_v13, %v248_v12  ;;  %v251_v16 = vld [vmem:[#allocation7 + $0x18] sm:$0xff]  ;;  %v252_v18 = vld [vmem:[#allocation7 + $0x20] sm:$0xff]  ;;  %v253_v19 = vld [vmem:[#allocation7 + $0x28] sm:$0xff]  ;;  %v71_v38 = vsub.s32 0, %v70_v37  ;;  %v79_v41 = vsub.s32 2, %v70_v37  ;;  %v75_v48 = vsub.s32 1, %v70_v37  ;;  %p546_p10 = scmp.ne.s32.totalorder %s349_s9, %s545_s10  ;;  %p551_p12 = scmp.lt.s32.totalorder %s545_s10, %s545_s10 }
  0x3c   :  { %428 = vmatpush1.bf16.msra.mxu1 %v427_v8  ;;  %v436_v17 = vpack.c.bf16 %v251_v16, %v250_v15  ;;  %v439_v20 = vpack.c.bf16 %v253_v19, %v252_v18  ;;  %v254_v21 = vld [vmem:[#allocation7 + $0x30] sm:$0xff]  ;;  %v255_v22 = vld [vmem:[#allocation7 + $0x38] sm:$0xff]  ;;  %v256_v24 = vld [vmem:[#allocation7 + $0x40] sm:$0xff] }
  0x3d   :  { %429 = vmatprep.subr.bf16.mxu1 %v581_v1  ;;  %434 = vmatpush3.bf16.msra.mxu0 %v433_v14  ;;  %v442_v23 = vpack.c.bf16 %v255_v22, %v254_v21  ;;  %v257_v25 = vld [vmem:[#allocation7 + $0x48] sm:$0xff]  ;;  %v258_v27 = vld [vmem:[#allocation7 + $0x50] sm:$0xff]  ;;  %v259_v28 = vld [vmem:[#allocation7 + $0x58] sm:$0xff]  ;;  %p552_p13 = por %p551_p12, %p550_p11 }
  0x3e   :  { %435 = vmatprep.subr.bf16.mxu0 %v581_v1  ;;  %v445_v26 = vpack.c.bf16 %v257_v25, %v256_v24  ;;  %v448_v29 = vpack.c.bf16 %v259_v28, %v258_v27  ;;  %v260_v30 = vld [vmem:[#allocation7 + $0x60] sm:$0xff]  ;;  %v261_v31 = vld [vmem:[#allocation7 + $0x68] sm:$0xff]  ;;  %v262_v33 = vld [vmem:[#allocation7 + $0x70] sm:$0xff] }
  0x3f   :  { %358 = vmatmul.mubr.msk.f32.vlgmr.msra.gmra.mrb[0].mxu1 %vm84_vm1, %v60_v10  ;;  %v451_v32 = vpack.c.bf16 %v261_v31, %v260_v30  ;;  %v263_v34 = vld [vmem:[#allocation7 + $0x78] sm:$0xff]  ;;  %v67_v39 = vld [vmem:[%s672_s2] sm:$0x7]  ;;  %p553_p0 = pnand %p552_p13, %p546_p10 }
  0x40   :  { %431 = vmatpush3.bf16.msra.mxu1 %v430_v11  ;;  %387 = vmatprep.mubr.msk.f32.mxu1 %vm582_vm0, %v580_v0  ;;  %v454_v35 = vpack.c.bf16 %v263_v34, %v262_v33  ;;  %v72_v40 = vrot.slane %v67_v39, %v71_v38  ;;  %v80_v45 = vrot.slane %v67_v39, %v79_v41  ;;  %v362_v2 = vld [vmem:[%s674_s4] ss:$0 sm:$0xff] }
  0x41   :  { %437 = vmatpush3.bf16.msra.mxu0 %v436_v17  ;;  %v76_v52 = vrot.slane %v67_v39, %v75_v48 }
  0x42   :  { %438 = vmatprep.subr.bf16.mxu0 %v581_v1 }
  0x43   :  { %388 = vmatmul.mubr.msk.f32.vlgmr.msra.gmra.mrb[2].mxu1 %vm84_vm1, %v60_v10 }
  0x45   :  { %440 = vmatpush3.bf16.msra.mxu0 %v439_v20 }
  0x46   :  { %441 = vmatprep.subr.bf16.mxu0 %v581_v1 }
  0x49   :  { %443 = vmatpush3.bf16.msra.mxu0 %v442_v23 }
  0x4a   :  { %444 = vmatprep.subr.bf16.mxu0 %v581_v1 }
  0x4d   :  { %446 = vmatpush3.bf16.msra.mxu0 %v445_v26 }
  0x4e   :  { %447 = vmatprep.subr.bf16.mxu0 %v581_v1 }
  0x51   :  { %449 = vmatpush3.bf16.msra.mxu0 %v448_v29 }
  0x52   :  { %450 = vmatprep.subr.bf16.mxu0 %v581_v1 }
  0x55   :  { %452 = vmatpush3.bf16.msra.mxu0 %v451_v32 }
  0x56   :  { %453 = vmatprep.subr.bf16.mxu0 %v581_v1 }
  0x59   :  { %455 = vmatpush3.bf16.msra.mxu0 %v454_v35 }
 0x112   :  { %v154_v42 = vpop.f32.mrb[0].mxu1 }
 0x113   :  { %v155_v43 = vadd.f32 %v154_v42, %v72_v40  ;;  %v156_v44 = vpop.f32.mrb[1].mxu1 }
 0x114   :  { %v157_v53 = vadd.f32 %v156_v44, %v76_v52 }
 0x115   :  { %v360_v46 = vmul.f32 -1.442695, %v155_v43 }
 0x116   :  { %v225_v47 = vpop.f32.mrb[2].mxu1 }
 0x117   :  { %467 = vpow2.f32 %v360_v46  ;;  %v226_v49 = vadd.f32 %v225_v47, %v80_v45  ;;  %v389_v50 = vpop.f32.mrb[3].mxu1 }
 0x119   :  { %v361_v51 = vmul.f32 -1.442695, %v226_v49 }
 0x11b   :  { %469 = vpow2.f32 %v361_v51 }
 0x11c   :  { %471 = vtanh.f32 %v157_v53 }
 0x121   :  { %v468_v54 = vpop.eup %467 }
 0x122   :  { %v232_v55 = vadd.f32 1.0, %v468_v54 }
 0x124   :  { %473 = vrcp.f32 %v232_v55 }
 0x125   :  { %v470_v56 = vpop.eup %469 }
 0x126   :  { %v239_v57 = vadd.f32 1.0, %v470_v56  ;;  %v472_v58 = vpop.eup %471 }
 0x128   :  { %475 = vrcp.f32 %v239_v57 }
 0x12e   :  { %v474_v59 = vpop.eup %473 }
 0x12f   :  { %v242_v60 = vmul.f32 %v474_v59, %v472_v58 }
 0x131   :  { %477 = vtanh.f32 %v242_v60 }
 0x132   :  { %v476_v61 = vpop.eup %475 }
 0x13b   :  { %v478_v62 = vpop.eup %477 }
 0x13c   :  { %v244_v63 = vmul.f32 %v478_v62, %v476_v61 }
 0x13e   :  { %vm245_vm2 = vcmp.ge.f32.partialorder %v244_v63, 0.0  ;;  %v246_v0 = vmul.f32 0.22916667, %v244_v63 }
 0x140   :  { %v247_v1 = vsel %vm245_vm2, %v244_v63, %v246_v0 }
 0x141   :  { %423 = vmatmul.mubr.f32.vlgmr.msra.gmra.mrb[0].mxu0 %v247_v1 }
 0x214   :  { %v337_v3 = vpop.f32.mrb[0].mxu0 }
 0x215   :  { %v338_v4 = vadd.f32 %v362_v2, %v337_v3  ;;  %v424_v5 = vpop.f32.mrb[1].mxu0 }
 0x217   :  { %341 = vst [vmem:[#allocation8] sm:$0xff] %v338_v4 }
 0x218   :  { %556 = shalt.err (!%p553_p0)
}
 0x219   :  { %s557_s13 = scalar_lea.hbm %s675_s5, 128 }
 0x21a   :  { %p558_p1 = scmp.ne.s32.totalorder %s675_s5, %s557_s13  ;;  %p561_p2 = scmp.lt.u32.totalorder %s557_s13, %s675_s5 }
 0x21c   :  { %p563_p3 = pnand %p561_p2, %p558_p1 }
 0x21e   :  { %566 = shalt.err (!%p563_p3)
}
 0x21f   :  { %351 = dma.vmem_to_hbm [thread:$0]  %s349_s9, 128, %s675_s5, [#allocation4]  }
 0x220   :  { %571 = dma.done.wait [#allocation4], 128  }
 0x221   :  { %572 = vsyncadd [#allocation4], 4294967168 }
 0x222   :  { %355 = vsyncpa [#allocation3], 1 }
 0x223   :  { %356 = vsyncpa [#allocation6], 1 }
 0x224   :  { %357 = vsyncpa [#allocation4], 1 }

</bundles_post_ra>
